<compile_context>
chip_gen: v7x
topology: tpu7x:2x2x1
jax: 0.10.0
libtpu: 0.0.40
codegen_flags: <defaults>
</compile_context>

<pallas_src>
import numpy as np
import jax
import jax.numpy as jnp
from jax.experimental import pallas as pl
from jax.experimental.pallas import tpu as pltpu

# ---------------- model hyper-params (small, consistent with the module) ----
B, CIN, H, W = 2, 4, 16, 16          # input x: [2, 4, 16, 16]  (NCHW)
KH = KW = 3                          # 3x3 conv, padding=1, stride=1
COUT = 32                            # conv output channels
NUM_CLASSES = 10                     # CIFAR-10 head
HW = H * W
HP, WP = H + 2, W + 2                # spatially padded extents
K = KH * KW * CIN                    # im2col contraction dim = 36
NCLS_PAD = 128                       # lane-dense padded logits dim


# ------------- Pallas kernel: fused conv+ReLU+pool+FC, whole batch ----------
def model_kernel(xpad_ref, wband_ref, bconv_ref, psum_ref, wpoolfc_ref,
                 bfc_ref, out_ref):
    # xpad_ref   : (B, HP, WP*CIN)      spatially padded input, rows=(b,h)
    # wband_ref  : (KH, WP*CIN, W*COUT) banded conv weight (one slab per kh)
    # bconv_ref  : (1, W*COUT)          conv bias tiled over the W positions
    # psum_ref   : (B, B*H)             per-batch row-sum ("pooling") matrix
    # wpoolfc_ref: (W*COUT, NCLS_PAD)   (mean over w)/HW folded into FC weight
    # bfc_ref    : (1, NCLS_PAD)
    # out_ref    : (B, NCLS_PAD)        lane-dense logits slab

    # conv as 3 accumulated lane-dense matmuls (one per kernel row kh)
    acc = jnp.zeros((B * H, W * COUT), jnp.float32)
    for kh in range(KH):
        lhs = xpad_ref[:, kh:kh + H, :].reshape(B * H, WP * CIN)   # (32, 72)
        acc = acc + jnp.dot(lhs, wband_ref[kh],
                            preferred_element_type=jnp.float32)    # (32, 512)

    h = jnp.maximum(acc + bconv_ref[...], 0.0)                      # bias + ReLU

    # pooling matmul: sum rows per batch (MXU op, no slice/concat shuffles)
    hsum = jnp.dot(psum_ref[...], h,
                   preferred_element_type=jnp.float32)              # (B, 512)

    # mean scale + FC head are fused into one matmul; bias added after.
    # (The wrapped model would also return the pooled features; the
    #  EvaluationWrapper discards them, so only logits are written out.)
    logits = jnp.dot(hsum, wpoolfc_ref[...],
                     preferred_element_type=jnp.float32) + bfc_ref[...]
    out_ref[...] = logits.astype(out_ref.dtype)                     # (B, 128)


# ------------- one-time parameter preparation (off the hot path) ------------
def prepare_params(w_conv, b_conv, w_fc, b_fc):
    """Precompute padded / re-laid-out weights once (not per forward call)."""
    w_conv = np.asarray(w_conv, np.float32)                 # (K=36, COUT) im2col layout
    b_conv = np.asarray(b_conv, np.float32).reshape(1, COUT)
    w_fc = np.asarray(w_fc, np.float32)                     # (COUT, NUM_CLASSES)
    b_fc = np.asarray(b_fc, np.float32).reshape(1, NUM_CLASSES)

    # banded conv weight: row = wp*CIN + c, col = w*COUT + o, nonzero iff wp = w + kw
    wtap = w_conv.reshape(KH, KW, CIN, COUT)
    wband = np.zeros((KH, WP * CIN, W * COUT), np.float32)
    for kh in range(KH):
        for kw in range(KW):
            for w in range(W):
                wp = w + kw
                wband[kh, wp * CIN:(wp + 1) * CIN,
                      w * COUT:(w + 1) * COUT] = wtap[kh, kw]

    bconv_row = np.tile(b_conv, (1, W))                     # (1, W*COUT)

    # per-batch row-sum matrix for the pooling matmul
    psum = np.zeros((B, B * H), np.float32)
    for b in range(B):
        psum[b, b * H:(b + 1) * H] = 1.0

    # pool (mean over H*W) + FC fused: tile w_fc over the W lane blocks / HW,
    # padded to a lane-dense 128-wide logits slab.
    wfc_pad = np.zeros((COUT, NCLS_PAD), np.float32)
    wfc_pad[:, :NUM_CLASSES] = w_fc
    wpoolfc = np.tile(wfc_pad, (W, 1)) / float(HW)          # (W*COUT, NCLS_PAD)

    bfc_pad = np.zeros((1, NCLS_PAD), np.float32)
    bfc_pad[:, :NUM_CLASSES] = b_fc

    return tuple(jnp.asarray(a) for a in
                 (wband, bconv_row, psum, wpoolfc, bfc_pad))


# ------------------------- per-call forward (jit'ed) ------------------------
@jax.jit
def evaluation_wrapper_forward(x_nchw, wband, bconv_row, psum, wpoolfc, bfc_pad):
    """EvaluationWrapper.forward: returns only the logits of the wrapped model."""
    # Only remaining XLA-side glue: tiny (8->10 KB) transpose + spatial pad.
    x = jnp.transpose(x_nchw, (0, 2, 3, 1)).astype(jnp.float32)   # (B, H, W, CIN)
    xpad = jnp.pad(x, ((0, 0), (1, 1), (1, 1), (0, 0)))           # (B, HP, WP, CIN)
    xpad = xpad.reshape(B, HP, WP * CIN)                          # (B, HP, WP*CIN)

    out_padded = pl.pallas_call(
        model_kernel,
        out_shape=jax.ShapeDtypeStruct((B, NCLS_PAD), jnp.float32),
        in_specs=[pl.BlockSpec(memory_space=pltpu.MemorySpace.VMEM)] * 6,
        out_specs=pl.BlockSpec(memory_space=pltpu.MemorySpace.VMEM),
    )(xpad, wband, bconv_row, psum, wpoolfc, bfc_pad)

    return out_padded[:, :NUM_CLASSES]                            # (B, NUM_CLASSES)


# ---------------- pure-JAX reference (sanity check) --------------------------
def reference_forward(x_nchw, w_conv, b_conv, w_fc, b_fc):
    x = jnp.transpose(x_nchw, (0, 2, 3, 1))
    xp = jnp.pad(x, ((0, 0), (1, 1), (1, 1), (0, 0)))
    slices = []
    for kh in range(KH):
        for kw in range(KW):
            slices.append(xp[:, kh:kh + H, kw:kw + W, :])
    patches = jnp.concatenate(slices, axis=-1).reshape(B, HW, K).astype(jnp.float32)
    h = jnp.einsum("bpk,ko->bpo", patches, w_conv,
                   precision=jax.lax.Precision.HIGHEST) + b_conv
    h = jnp.maximum(h, 0.0)
    pooled = jnp.mean(h, axis=1)
    return jnp.einsum("bo,oc->bc", pooled, w_fc,
                      precision=jax.lax.Precision.HIGHEST) + b_fc


if __name__ == "__main__":
    key = jax.random.PRNGKey(0)
    kx, kw1, kb1, kw2, kb2 = jax.random.split(key, 5)

    # deterministic inputs + parameters (synthetic; no checkpoint load)
    x = jax.random.normal(kx, (B, CIN, H, W), dtype=jnp.float32)   # NCHW like PyTorch
    w_conv = jax.random.normal(kw1, (K, COUT), dtype=jnp.float32) * 0.05
    b_conv = jax.random.normal(kb1, (1, COUT), dtype=jnp.float32) * 0.05
    w_fc = jax.random.normal(kw2, (COUT, NUM_CLASSES), dtype=jnp.float32) * 0.05
    b_fc = jax.random.normal(kb2, (1, NUM_CLASSES), dtype=jnp.float32) * 0.05

    # one-time weight re-layout / padding (hoisted out of the per-call path)
    params = prepare_params(w_conv, b_conv, w_fc, b_fc)

    out = evaluation_wrapper_forward(x, *params)
    out = jax.block_until_ready(out)

    ref = jax.block_until_ready(reference_forward(x, w_conv, b_conv, w_fc, b_fc))
    assert out.shape == (B, NUM_CLASSES)
    assert jnp.allclose(out, ref, rtol=2e-3, atol=2e-3)

    print("KERNEL_OK")
</pallas_src>

<mosaic_0001>
module attributes {stable_mosaic.version = 11 : i64} {
  func.func @model_kernel(%arg0: memref<2x18x72xf32, #tpu.memory_space<vmem>>, %arg1: memref<3x72x512xf32, #tpu.memory_space<vmem>>, %arg2: memref<1x512xf32, #tpu.memory_space<vmem>>, %arg3: memref<2x32xf32, #tpu.memory_space<vmem>>, %arg4: memref<512x128xf32, #tpu.memory_space<vmem>>, %arg5: memref<1x128xf32, #tpu.memory_space<vmem>>, %arg6: memref<2x128xf32, #tpu.memory_space<vmem>>) attributes {dimension_semantics = [], scalar_prefetch = 0 : i64, scratch_operands = 0 : i64, tpu.core_type = #tpu.core_type<tc>} {
    %cst = arith.constant 0.000000e+00 : f32
    %0 = vector.broadcast %cst : f32 to vector<32x512xf32>
    %c0 = arith.constant 0 : index
    %c0_0 = arith.constant 0 : index
    %c0_1 = arith.constant 0 : index
    %1 = vector.load %arg0[%c0, %c0_0, %c0_1] : memref<2x18x72xf32, #tpu.memory_space<vmem>>, vector<2x16x72xf32>
    %2 = vector.shape_cast %1 : vector<2x16x72xf32> to vector<32x72xf32>
    %c0_2 = arith.constant 0 : index
    %c0_3 = arith.constant 0 : index
    %c0_4 = arith.constant 0 : index
    %3 = vector.load %arg1[%c0_2, %c0_3, %c0_4] : memref<3x72x512xf32, #tpu.memory_space<vmem>>, vector<1x72x512xf32>
    %4 = vector.shape_cast %3 : vector<1x72x512xf32> to vector<72x512xf32>
    %cst_5 = arith.constant dense<0.000000e+00> : vector<32x512xf32>
    %5 = tpu.matmul %2, %4, %cst_5 {dimension_numbers = #tpu.dot_dimension_numbers<[1], [0], [0], [1], [0, 0, 1, 1], [], []>} : vector<32x72xf32>, vector<72x512xf32>, vector<32x512xf32> -> vector<32x512xf32>
    %6 = arith.addf %0, %5 : vector<32x512xf32>
    %c0_6 = arith.constant 0 : index
    %c1 = arith.constant 1 : index
    %c0_7 = arith.constant 0 : index
    %7 = vector.load %arg0[%c0_6, %c1, %c0_7] : memref<2x18x72xf32, #tpu.memory_space<vmem>>, vector<2x16x72xf32>
    %8 = vector.shape_cast %7 : vector<2x16x72xf32> to vector<32x72xf32>
    %c1_8 = arith.constant 1 : index
    %c0_9 = arith.constant 0 : index
    %c0_10 = arith.constant 0 : index
    %9 = vector.load %arg1[%c1_8, %c0_9, %c0_10] : memref<3x72x512xf32, #tpu.memory_space<vmem>>, vector<1x72x512xf32>
    %10 = vector.shape_cast %9 : vector<1x72x512xf32> to vector<72x512xf32>
    %cst_11 = arith.constant dense<0.000000e+00> : vector<32x512xf32>
    %11 = tpu.matmul %8, %10, %cst_11 {dimension_numbers = #tpu.dot_dimension_numbers<[1], [0], [0], [1], [0, 0, 1, 1], [], []>} : vector<32x72xf32>, vector<72x512xf32>, vector<32x512xf32> -> vector<32x512xf32>
    %12 = arith.addf %6, %11 : vector<32x512xf32>
    %c0_12 = arith.constant 0 : index
    %c2 = arith.constant 2 : index
    %c0_13 = arith.constant 0 : index
    %13 = vector.load %arg0[%c0_12, %c2, %c0_13] : memref<2x18x72xf32, #tpu.memory_space<vmem>>, vector<2x16x72xf32>
    %14 = vector.shape_cast %13 : vector<2x16x72xf32> to vector<32x72xf32>
    %c2_14 = arith.constant 2 : index
    %c0_15 = arith.constant 0 : index
    %c0_16 = arith.constant 0 : index
    %15 = vector.load %arg1[%c2_14, %c0_15, %c0_16] : memref<3x72x512xf32, #tpu.memory_space<vmem>>, vector<1x72x512xf32>
    %16 = vector.shape_cast %15 : vector<1x72x512xf32> to vector<72x512xf32>
    %cst_17 = arith.constant dense<0.000000e+00> : vector<32x512xf32>
    %17 = tpu.matmul %14, %16, %cst_17 {dimension_numbers = #tpu.dot_dimension_numbers<[1], [0], [0], [1], [0, 0, 1, 1], [], []>} : vector<32x72xf32>, vector<72x512xf32>, vector<32x512xf32> -> vector<32x512xf32>
    %18 = arith.addf %12, %17 : vector<32x512xf32>
    %c0_18 = arith.constant 0 : index
    %c0_19 = arith.constant 0 : index
    %19 = vector.load %arg2[%c0_18, %c0_19] : memref<1x512xf32, #tpu.memory_space<vmem>>, vector<1x512xf32>
    %20 = vector.broadcast %19 : vector<1x512xf32> to vector<32x512xf32>
    %21 = arith.addf %18, %20 : vector<32x512xf32>
    %cst_20 = arith.constant 0.000000e+00 : f32
    %22 = vector.broadcast %cst_20 : f32 to vector<32x512xf32>
    %23 = arith.maximumf %21, %22 : vector<32x512xf32>
    %c0_21 = arith.constant 0 : index
    %c0_22 = arith.constant 0 : index
    %24 = vector.load %arg3[%c0_21, %c0_22] : memref<2x32xf32, #tpu.memory_space<vmem>>, vector<2x32xf32>
    %cst_23 = arith.constant dense<0.000000e+00> : vector<2x512xf32>
    %25 = tpu.matmul %24, %23, %cst_23 {dimension_numbers = #tpu.dot_dimension_numbers<[1], [0], [0], [1], [0, 0, 1, 1], [], []>} : vector<2x32xf32>, vector<32x512xf32>, vector<2x512xf32> -> vector<2x512xf32>
    %c0_24 = arith.constant 0 : index
    %c0_25 = arith.constant 0 : index
    %26 = vector.load %arg4[%c0_24, %c0_25] : memref<512x128xf32, #tpu.memory_space<vmem>>, vector<512x128xf32>
    %cst_26 = arith.constant dense<0.000000e+00> : vector<2x128xf32>
    %27 = tpu.matmul %25, %26, %cst_26 {dimension_numbers = #tpu.dot_dimension_numbers<[1], [0], [0], [1], [0, 0, 1, 1], [], []>} : vector<2x512xf32>, vector<512x128xf32>, vector<2x128xf32> -> vector<2x128xf32>
    %c0_27 = arith.constant 0 : index
    %c0_28 = arith.constant 0 : index
    %28 = vector.load %arg5[%c0_27, %c0_28] : memref<1x128xf32, #tpu.memory_space<vmem>>, vector<1x128xf32>
    %29 = vector.broadcast %28 : vector<1x128xf32> to vector<2x128xf32>
    %30 = arith.addf %27, %29 : vector<2x128xf32>
    %c0_29 = arith.constant 0 : index
    %c0_30 = arith.constant 0 : index
    %31 = vector.load %arg6[%c0_29, %c0_30] : memref<2x128xf32, #tpu.memory_space<vmem>>, vector<2x128xf32>
    tpu.vector_store %arg6[%c0_29, %c0_30], %30 {strides = array<i32>} : memref<2x128xf32, #tpu.memory_space<vmem>>, vector<2x128xf32>,
    return
  }
}

</mosaic_0001>

<bundles_post_ra>
// kernel: evaluation_wrapper_forward.1
= control target key start
LH: loop header
LB: loop body
LE: loop exit
PB: predicated region body
PF: predicated region fallthrough
CT: control target
= control target key end

     0   :  { %11 = vsyncpa [#allocation3], 0  ;;  %s1886_s0 = inlined_call_operand.vmem [shape: f32[2,18,72], index: 0, kind: input, shape index: {}]   ;;  %s1887_s1 = inlined_call_operand.hbm [shape: f32[3,72,512], index: 1, kind: input, shape index: {}]   ;;  %s1888_s2 = inlined_call_operand.vmem [shape: f32[1,512], index: 2, kind: input, shape index: {}]   ;;  %s1889_s3 = inlined_call_operand.vmem [shape: f32[2,32], index: 3, kind: input, shape index: {}]   ;;  %s1890_s4 = inlined_call_operand.vmem [shape: f32[512,128], index: 4, kind: input, shape index: {}]   ;;  %s1891_s5 = inlined_call_operand.vmem [shape: f32[1,128], index: 5, kind: input, shape index: {}]   ;;  %s1892_s6 = inlined_call_operand.hbm [shape: f32[2,128], index: 6, kind: output, shape index: {}]  }
   0x1   :  { %12 = vsyncpa [#allocation4], 0  ;;  %s1533_s21 = smov [#allocation2]   ;;  %s1485_s25 = scalar_lea.hbm %s1887_s1, 13824 }
   0x2   :  { %s20_s22 = sshll.u32 %s1533_s21, 4  ;;  %p1486_p0 = scmp.ne.s32.totalorder %s1887_s1, %s1485_s25  ;;  %s21_s22 = int_to_ptr.vmem [resolvable:$true] %s20_s22 }
   0x3   :  { %p1489_p1 = scmp.lt.u32.totalorder %s1485_s25, %s1887_s1 }
   0x5   :  { %p1491_p2 = pnand %p1489_p1, %p1486_p0 }
   0x7   :  { %1494 = shalt.err (!%p1491_p2)
}
   0x8   :  { %s1495_s30 = scalar_lea.vmem %s21_s22, 13824  ;;  %p1500_p4 = scmp.lt.s32.totalorder %s21_s22, %s21_s22 }
   0x9   :  { %p1496_p3 = scmp.ne.s32.totalorder %s21_s22, %s1495_s30  ;;  %p1501_p5 = scmp.lt.s32.totalorder %s1495_s30, %s1495_s30 }
   0xb   :  { %p1502_p6 = por %p1501_p5, %p1500_p4 }
   0xd   :  { %p1503_p7 = pnand %p1502_p6, %p1496_p3 }
   0xf   :  { %1506 = shalt.err (!%p1503_p7)
}
  0x10   :  { %s1534_s7 = smov 512   ;;  %s1535_s8 = smov 32  }
  0x11   :  { %26 = dma.hbm_to_vmem [thread:$0]  %s1887_s1, 13824, %s21_s22, [#allocation3], %s1534_s7, %s1534_s7, %s1535_s8  }
  0x12   :  { %1529 = dma.done.wait [#allocation3], 13824  }
  0x13   :  { %1530 = vsyncadd [#allocation3], 4294953472  ;;  %v1536_v0 = vmov 0.0   ;;  %v84_v1 = vld [vmem:[#allocation2 + $0x128] sm:$0xff]  ;;  %v86_v3 = vld [vmem:[#allocation2 + $0x138] sm:$0xff]  ;;  %vm119_vm0 = vcmask 588800  }
  0x14   :  { %196 = vmatprep.mubr.f32.mxu0 %v1536_v0  ;;  %285 = vmatprep.mubr.f32.mxu1 %v1536_v0  ;;  %v88_v2 = vld [vmem:[#allocation2 + $0x148] sm:$0xff]  ;;  %v90_v5 = vld [vmem:[#allocation2 + $0x158] sm:$0xff]  ;;  %v83_v6 = vld [vmem:[#allocation2 + $0x120] sm:$0xff]  ;;  %vm802_vm1 = vcmask 261120  }
  0x15   :  { %v1272_v4 = vpack.c.bf16 %v88_v2, %v84_v1  ;;  %v87_v7 = vld [vmem:[#allocation2 + $0x140] sm:$0xff]  ;;  %v1288_v8 = vpack.c.bf16 %v90_v5, %v86_v3  ;;  %v85_v10 = vld [vmem:[#allocation2 + $0x130] sm:$0xff]  ;;  %v92_v12 = vld [vmem:[#allocation2 + $0x168] sm:$0xff] }
  0x16   :  { %v1274_v9 = vpack.c.bf16 %v87_v7, %v83_v6  ;;  %v89_v11 = vld [vmem:[#allocation2 + $0x150] sm:$0xff]  ;;  %v96_v14 = vld [vmem:[#allocation2 + $0x188] sm:$0xff]  ;;  %v94_v15 = vld [vmem:[#allocation2 + $0x178] sm:$0xff] }
  0x17   :  { %1273 = vmatprep.subr.bf16.mxu0 %v1272_v4  ;;  %v1290_v13 = vpack.c.bf16 %v89_v11, %v85_v10  ;;  %v98_v16 = vld [vmem:[#allocation2 + $0x198] sm:$0xff]  ;;  %1289 = vmatprep.subr.bf16.mxu1 %v1288_v8  ;;  %v1276_v17 = vpack.c.bf16 %v96_v14, %v92_v12  ;;  %v91_v19 = vld [vmem:[#allocation2 + $0x160] sm:$0xff]  ;;  %v93_v21 = vld [vmem:[#allocation2 + $0x170] sm:$0xff] }
  0x18   :  { %1275 = vmatpush1.bf16.msra.mxu0 %v1274_v9  ;;  %v1292_v18 = vpack.c.bf16 %v98_v16, %v94_v15  ;;  %v95_v20 = vld [vmem:[#allocation2 + $0x180] sm:$0xff]  ;;  %v97_v23 = vld [vmem:[#allocation2 + $0x190] sm:$0xff]  ;;  %v100_v24 = vld [vmem:[#allocation2 + $0x1a8] sm:$0xff] }
  0x19   :  { %1291 = vmatpush1.bf16.msra.mxu1 %v1290_v13  ;;  %v1278_v22 = vpack.c.bf16 %v95_v20, %v91_v19  ;;  %v104_v25 = vld [vmem:[#allocation2 + $0x1c8] sm:$0xff]  ;;  %1277 = vmatprep.subr.bf16.mxu0 %v1276_v17  ;;  %v1294_v26 = vpack.c.bf16 %v97_v23, %v93_v21  ;;  %v102_v28 = vld [vmem:[#allocation2 + $0x1b8] sm:$0xff]  ;;  %v99_v30 = vld [vmem:[#allocation2 + $0x1a0] sm:$0xff] }
  0x1a   :  { %1293 = vmatprep.subr.bf16.mxu1 %v1292_v18  ;;  %v1280_v27 = vpack.c.bf16 %v104_v25, %v100_v24  ;;  %v106_v29 = vld [vmem:[#allocation2 + $0x1d8] sm:$0xff]  ;;  %v103_v32 = vld [vmem:[#allocation2 + $0x1c0] sm:$0xff]  ;;  %v101_v33 = vld [vmem:[#allocation2 + $0x1b0] sm:$0xff] }
  0x1b   :  { %v1296_v31 = vpack.c.bf16 %v106_v29, %v102_v28  ;;  %v105_v34 = vld [vmem:[#allocation2 + $0x1d0] sm:$0xff]  ;;  %v1282_v35 = vpack.c.bf16 %v103_v32, %v99_v30  ;;  %v108_v36 = vld [vmem:[#allocation2 + $0x1e8] sm:$0xff]  ;;  %v110_v38 = vld [vmem:[#allocation2 + $0x1f8] sm:$0xff] }
  0x1c   :  { %1279 = vmatpush1.bf16.msra.mxu0 %v1278_v22  ;;  %v112_v37 = vld [vmem:[#allocation2 + $0x208] sm:$0xff]  ;;  %v1298_v39 = vpack.c.bf16 %v105_v34, %v101_v33  ;;  %v114_v41 = vld [vmem:[#allocation2 + $0x218] sm:$0xff]  ;;  %v107_v42 = vld [vmem:[#allocation2 + $0x1e0] sm:$0xff] }
  0x1d   :  { %1295 = vmatpush1.bf16.msra.mxu1 %v1294_v26  ;;  %1281 = vmatprep.subr.bf16.mxu0 %v1280_v27  ;;  %v1284_v40 = vpack.c.bf16 %v112_v37, %v108_v36  ;;  %v111_v43 = vld [vmem:[#allocation2 + $0x200] sm:$0xff]  ;;  %v1300_v44 = vpack.c.bf16 %v114_v41, %v110_v38  ;;  %v109_v45 = vld [vmem:[#allocation2 + $0x1f0] sm:$0xff]  ;;  %v116_v49 = vld [vmem:[#allocation2 + $0x228] sm:$0xff] }
  0x1e   :  { %1297 = vmatprep.subr.bf16.mxu1 %v1296_v31  ;;  %v113_v46 = vld [vmem:[#allocation2 + $0x210] sm:$0xff]  ;;  %v1286_v47 = vpack.c.bf16 %v111_v43, %v107_v42  ;;  %v118_v50 = vld [vmem:[#allocation2 + $0x238] sm:$0xff]  ;;  %v43_v51 = vld [vmem:[#allocation2 + $0x8] sm:$0xff] }
  0x1f   :  { %v1302_v48 = vpack.c.bf16 %v113_v46, %v109_v45  ;;  %v47_v52 = vld [vmem:[#allocation2 + $0x28] sm:$0xff]  ;;  %v115_v53 = vld [vmem:[#allocation2 + $0x220] sm:$0xff]  ;;  %v45_v54 = vld [vmem:[#allocation2 + $0x18] sm:$0xff] }
  0x20   :  { %1283 = vmatpush1.bf16.msra.mxu0 %v1282_v35  ;;  %v49_v55 = vld [vmem:[#allocation2 + $0x38] sm:$0xff]  ;;  %v42_v56 = vld [vmem:[#allocation2] sm:$0xff]  ;;  %v44_v58 = vld [vmem:[#allocation2 + $0x10] sm:$0xff]  ;;  %v1304_v59 = vpack.c.bf16 %v47_v52, %v43_v51 }
  0x21   :  { %1299 = vmatpush1.bf16.msra.mxu1 %v1298_v39  ;;  %1285 = vmatprep.subr.bf16.mxu0 %v1284_v40  ;;  %v46_v57 = vld [vmem:[#allocation2 + $0x20] sm:$0xff]  ;;  %v48_v60 = vld [vmem:[#allocation2 + $0x30] sm:$0xff]  ;;  %v51_v61 = vld [vmem:[#allocation2 + $0x48] sm:$0xff]  ;;  %v1320_v1 = vpack.c.bf16 %v49_v55, %v45_v54 }
  0x22   :  { %1301 = vmatprep.subr.bf16.mxu1 %v1300_v44  ;;  %v55_v62 = vld [vmem:[#allocation2 + $0x68] sm:$0xff]  ;;  %v117_v63 = vld [vmem:[#allocation2 + $0x230] sm:$0xff]  ;;  %v53_v2 = vld [vmem:[#allocation2 + $0x58] sm:$0xff]  ;;  %v1306_v5 = vpack.c.bf16 %v46_v57, %v42_v56  ;;  %v1322_v6 = vpack.c.bf16 %v48_v60, %v44_v58 }
  0x23   :  { %v57_v3 = vld [vmem:[#allocation2 + $0x78] sm:$0xff]  ;;  %v78_v4 = vld [vmem:[%s1886_s0 + $0x1] sm:$0xff]  ;;  %v1308_v7 = vpack.c.bf16 %v55_v62, %v51_v61  ;;  %v52_v10 = vld [vmem:[#allocation2 + $0x50] sm:$0xff] }
  0x24   :  { %1287 = vmatpush1.bf16.msra.mxu0 %v1286_v47  ;;  %v50_v8 = vld [vmem:[#allocation2 + $0x40] sm:$0xff]  ;;  %v1324_v11 = vpack.c.bf16 %v57_v3, %v53_v2  ;;  %v56_v12 = vld [vmem:[#allocation2 + $0x70] sm:$0xff]  ;;  %v59_v13 = vld [vmem:[#allocation2 + $0x88] sm:$0xff] }
  0x25   :  { %1303 = vmatpush1.bf16.msra.mxu1 %v1302_v48  ;;  %148 = vmatprep.subr.mxu0 %v116_v49  ;;  %v54_v9 = vld [vmem:[#allocation2 + $0x60] sm:$0xff]  ;;  %v63_v14 = vld [vmem:[#allocation2 + $0xa8] sm:$0xff]  ;;  %v61_v15 = vld [vmem:[#allocation2 + $0x98] sm:$0xff]  ;;  %v1326_v19 = vpack.c.bf16 %v56_v12, %v52_v10 }
  0x26   :  { %237 = vmatprep.subr.mxu1 %v118_v50  ;;  %v65_v16 = vld [vmem:[#allocation2 + $0xb8] sm:$0xff]  ;;  %v1310_v17 = vpack.c.bf16 %v54_v9, %v50_v8  ;;  %v79_v18 = vld [vmem:[%s1886_s0 + $0x9] sm:$0xff]  ;;  %v1312_v20 = vpack.c.bf16 %v63_v14, %v59_v13  ;;  %v58_v21 = vld [vmem:[#allocation2 + $0x80] sm:$0xff] }
  0x27   :  { %v62_v22 = vld [vmem:[#allocation2 + $0xa0] sm:$0xff]  ;;  %v60_v23 = vld [vmem:[#allocation2 + $0x90] sm:$0xff]  ;;  %v1328_v24 = vpack.c.bf16 %v65_v16, %v61_v15  ;;  %v67_v26 = vld [vmem:[#allocation2 + $0xc8] sm:$0xff] }
  0x28   :  { %149 = vmatpush1.msra.mxu0 %v115_v53  ;;  %v64_v25 = vld [vmem:[#allocation2 + $0xb0] sm:$0xff]  ;;  %v71_v27 = vld [vmem:[#allocation2 + $0xe8] sm:$0xff]  ;;  %v69_v28 = vld [vmem:[#allocation2 + $0xd8] sm:$0xff]  ;;  %v1314_v30 = vpack.c.bf16 %v62_v22, %v58_v21 }
  0x29   :  { %238 = vmatpush1.msra.mxu1 %v117_v63  ;;  %1305 = vmatprep.subr.bf16.mxu0 %v1304_v59  ;;  %v73_v29 = vld [vmem:[#allocation2 + $0xf8] sm:$0xff]  ;;  %v1330_v32 = vpack.c.bf16 %v64_v25, %v60_v23  ;;  %v1316_v33 = vpack.c.bf16 %v71_v27, %v67_v26  ;;  %v66_v34 = vld [vmem:[#allocation2 + $0xc0] sm:$0xff]  ;;  %v68_v37 = vld [vmem:[#allocation2 + $0xd0] sm:$0xff] }
  0x2a   :  { %1321 = vmatprep.subr.bf16.mxu1 %v1320_v1  ;;  %1175 = vmatmul.mubr.msk.f32.vlgmr.msra.gmra.mrb[0].mxu0 %vm119_vm0, %v78_v4  ;;  %v80_v31 = vld [vmem:[%s1886_s0 + $0x19] sm:$0xff]  ;;  %v1332_v36 = vpack.c.bf16 %v73_v29, %v69_v28  ;;  %v72_v38 = vld [vmem:[#allocation2 + $0xf0] sm:$0xff]  ;;  %v81_v40 = vld [vmem:[%s1886_s0 + $0x21] sm:$0xff] }
  0x2b   :  { %1179 = vmatmul.mubr.msk.f32.vlgmr.msra.gmra.mrb[0].mxu1 %vm119_vm0, %v78_v4  ;;  %1307 = vmatpush1.bf16.msra.mxu0 %v1306_v5  ;;  %v70_v35 = vld [vmem:[#allocation2 + $0xe0] sm:$0xff]  ;;  %v1334_v41 = vpack.c.bf16 %v72_v38, %v68_v37  ;;  %v75_v42 = vld [vmem:[#allocation2 + $0x108] sm:$0xff]  ;;  %v77_v43 = vld [vmem:[#allocation2 + $0x118] sm:$0xff] }
  0x2c   :  { %1323 = vmatpush1.bf16.msra.mxu1 %v1322_v6  ;;  %1309 = vmatprep.subr.bf16.mxu0 %v1308_v7  ;;  %v1318_v39 = vpack.c.bf16 %v70_v35, %v66_v34  ;;  %v506_v44 = vld [vmem:[#allocation2 + $0x248] sm:$0xff]  ;;  %v74_v46 = vld [vmem:[#allocation2 + $0x100] sm:$0xff]  ;;  %v508_v47 = vld [vmem:[#allocation2 + $0x258] sm:$0xff] }
  0x2d   :  { %1325 = vmatprep.subr.bf16.mxu1 %v1324_v11  ;;  %202 = vmatprep.mubr.f32.mxu0 %v1536_v0  ;;  %v510_v45 = vld [vmem:[#allocation2 + $0x268] sm:$0xff]  ;;  %v512_v48 = vld [vmem:[#allocation2 + $0x278] sm:$0xff]  ;;  %v505_v49 = vld [vmem:[#allocation2 + $0x240] sm:$0xff] }
  0x2e   :  { %291 = vmatprep.mubr.f32.mxu1 %v1536_v0  ;;  %1176 = vmatmul.mubr.msk.f32.gmra.mrb[2].mxu0 %vm119_vm0, %v79_v18  ;;  %v509_v50 = vld [vmem:[#allocation2 + $0x260] sm:$0xff]  ;;  %v507_v51 = vld [vmem:[#allocation2 + $0x250] sm:$0xff]  ;;  %v1336_v52 = vpack.c.bf16 %v510_v45, %v506_v44  ;;  %v514_v54 = vld [vmem:[#allocation2 + $0x288] sm:$0xff]  ;;  %v1352_v57 = vpack.c.bf16 %v512_v48, %v508_v47 }
  0x2f   :  { %1311 = vmatpush1.bf16.msra.mxu0 %v1310_v17  ;;  %1180 = vmatmul.mubr.msk.f32.gmra.mrb[2].mxu1 %vm119_vm0, %v79_v18  ;;  %v511_v53 = vld [vmem:[#allocation2 + $0x270] sm:$0xff]  ;;  %v518_v55 = vld [vmem:[#allocation2 + $0x2a8] sm:$0xff]  ;;  %v516_v58 = vld [vmem:[#allocation2 + $0x298] sm:$0xff]  ;;  %v1338_v61 = vpack.c.bf16 %v509_v50, %v505_v49 }
  0x30   :  { %1327 = vmatpush1.bf16.msra.mxu1 %v1326_v19  ;;  %1313 = vmatprep.subr.bf16.mxu0 %v1312_v20  ;;  %v76_v56 = vld [vmem:[#allocation2 + $0x110] sm:$0xff]  ;;  %v520_v59 = vld [vmem:[#allocation2 + $0x2b8] sm:$0xff]  ;;  %v38_v60 = vld [vmem:[%s1886_s0] sm:$0xff]  ;;  %v1354_v62 = vpack.c.bf16 %v511_v53, %v507_v51  ;;  %v1340_v63 = vpack.c.bf16 %v518_v55, %v514_v54 }
  0x31   :  { %1329 = vmatprep.subr.bf16.mxu1 %v1328_v24  ;;  %208 = vmatprep.mubr.f32.mxu0 %v1536_v0  ;;  %v513_v1 = vld [vmem:[#allocation2 + $0x280] sm:$0xff]  ;;  %v515_v3 = vld [vmem:[#allocation2 + $0x290] sm:$0xff]  ;;  %v1356_v4 = vpack.c.bf16 %v520_v59, %v516_v58  ;;  %v522_v6 = vld [vmem:[#allocation2 + $0x2c8] sm:$0xff] }
  0x32   :  { %297 = vmatprep.mubr.f32.mxu1 %v1536_v0  ;;  %1177 = vmatmul.mubr.msk.f32.gmra.mrb[4].mxu0 %vm119_vm0, %v80_v31  ;;  %v517_v2 = vld [vmem:[#allocation2 + $0x2a0] sm:$0xff]  ;;  %v519_v5 = vld [vmem:[#allocation2 + $0x2b0] sm:$0xff]  ;;  %v526_v7 = vld [vmem:[#allocation2 + $0x2e8] sm:$0xff] }
  0x33   :  { %1315 = vmatpush1.bf16.msra.mxu0 %v1314_v30  ;;  %1181 = vmatmul.mubr.msk.f32.gmra.mrb[4].mxu1 %vm119_vm0, %v80_v31  ;;  %v524_v8 = vld [vmem:[#allocation2 + $0x2d8] sm:$0xff]  ;;  %v1342_v10 = vpack.c.bf16 %v517_v2, %v513_v1  ;;  %v39_v11 = vld [vmem:[%s1886_s0 + $0x8] sm:$0xff]  ;;  %v1358_v12 = vpack.c.bf16 %v519_v5, %v515_v3  ;;  %v1344_v13 = vpack.c.bf16 %v526_v7, %v522_v6  ;;  %v521_v14 = vld [vmem:[#allocation2 + $0x2c0] sm:$0xff] }
  0x34   :  { %1331 = vmatpush1.bf16.msra.mxu1 %v1330_v32  ;;  %1317 = vmatprep.subr.bf16.mxu0 %v1316_v33  ;;  %v528_v9 = vld [vmem:[#allocation2 + $0x2f8] sm:$0xff]  ;;  %v525_v15 = vld [vmem:[#allocation2 + $0x2e0] sm:$0xff]  ;;  %v523_v16 = vld [vmem:[#allocation2 + $0x2d0] sm:$0xff] }
  0x35   :  { %1333 = vmatprep.subr.bf16.mxu1 %v1332_v36  ;;  %214 = vmatprep.mubr.f32.mxu0 %v1536_v0  ;;  %v1360_v17 = vpack.c.bf16 %v528_v9, %v524_v8  ;;  %v527_v18 = vld [vmem:[#allocation2 + $0x2f0] sm:$0xff]  ;;  %v530_v19 = vld [vmem:[#allocation2 + $0x308] sm:$0xff]  ;;  %v532_v21 = vld [vmem:[#allocation2 + $0x318] sm:$0xff]  ;;  %v1346_v23 = vpack.c.bf16 %v525_v15, %v521_v14 }
  0x36   :  { %303 = vmatprep.mubr.f32.mxu1 %v1536_v0  ;;  %1178 = vmatmul.mubr.msk.f32.gmra.mrb[6].mxu0 %vm119_vm0, %v81_v40  ;;  %v534_v20 = vld [vmem:[#allocation2 + $0x328] sm:$0xff]  ;;  %v536_v22 = vld [vmem:[#allocation2 + $0x338] sm:$0xff]  ;;  %v1362_v25 = vpack.c.bf16 %v527_v18, %v523_v16  ;;  %v529_v27 = vld [vmem:[#allocation2 + $0x300] sm:$0xff] }
  0x37   :  { %1319 = vmatpush1.bf16.msra.mxu0 %v1318_v39  ;;  %1182 = vmatmul.mubr.msk.f32.gmra.mrb[6].mxu1 %vm119_vm0, %v81_v40  ;;  %v40_v24 = vld [vmem:[%s1886_s0 + $0x18] sm:$0xff]  ;;  %v1348_v26 = vpack.c.bf16 %v534_v20, %v530_v19  ;;  %v533_v28 = vld [vmem:[#allocation2 + $0x320] sm:$0xff]  ;;  %v1364_v29 = vpack.c.bf16 %v536_v22, %v532_v21  ;;  %v531_v30 = vld [vmem:[#allocation2 + $0x310] sm:$0xff] }
  0x38   :  { %1335 = vmatpush1.bf16.msra.mxu1 %v1334_v41  ;;  %338 = vmatprep.subr.mxu0 %v75_v42  ;;  %v535_v31 = vld [vmem:[#allocation2 + $0x330] sm:$0xff]  ;;  %v1350_v32 = vpack.c.bf16 %v533_v28, %v529_v27  ;;  %v41_v33 = vld [vmem:[%s1886_s0 + $0x20] sm:$0xff]  ;;  %v538_v35 = vld [vmem:[#allocation2 + $0x348] sm:$0xff] }
  0x39   :  { %427 = vmatprep.subr.mxu1 %v77_v43  ;;  %386 = vmatprep.mubr.f32.mxu0 %v1536_v0  ;;  %v1366_v34 = vpack.c.bf16 %v535_v31, %v531_v30  ;;  %v540_v36 = vld [vmem:[#allocation2 + $0x358] sm:$0xff]  ;;  %v537_v37 = vld [vmem:[#allocation2 + $0x340] sm:$0xff]  ;;  %v539_v38 = vld [vmem:[#allocation2 + $0x350] sm:$0xff]  ;;  %v749_v43 = vlaneseq }
  0x3a   :  { %475 = vmatprep.mubr.f32.mxu1 %v1536_v0  ;;  %v500_v39 = vld [vmem:[%s1886_s0 + $0x2] sm:$0xff]  ;;  %v501_v40 = vld [vmem:[%s1886_s0 + $0xa] sm:$0xff]  ;;  %v502_v41 = vld [vmem:[%s1886_s0 + $0x1a] sm:$0xff] }
  0x3b   :  { %339 = vmatpush1.msra.mxu0 %v74_v46  ;;  %v503_v42 = vld [vmem:[%s1886_s0 + $0x22] sm:$0xff]  ;;  %v750_v44 = vshrl.u32 %v749_v43, 7 }
  0x3c   :  { %428 = vmatpush1.msra.mxu1 %v76_v56  ;;  %1337 = vmatprep.subr.bf16.mxu0 %v1336_v52  ;;  %v747_v46 = vld [vmem:[%s1888_s2] sm:$0xf]  ;;  %v997_v43 = vld [vmem:[%s1890_s4 + $0x188] sm:$0xff] }
  0x3d   :  { %1353 = vmatprep.subr.bf16.mxu1 %v1352_v57  ;;  %1183 = vmatmul.mubr.msk.f32.vlgmr.msra.gmra.mrb[0].mxu0 %vm119_vm0, %v38_v60  ;;  %v751_v45 = vsub.s32 0, %v750_v44  ;;  %v759_v47 = vsub.s32 2, %v750_v44  ;;  %v755_v48 = vsub.s32 1, %v750_v44  ;;  %v763_v49 = vsub.s32 3, %v750_v44 }
  0x3e   :  { %1187 = vmatmul.mubr.msk.f32.vlgmr.msra.gmra.mrb[0].mxu1 %vm119_vm0, %v38_v60  ;;  %1339 = vmatpush1.bf16.msra.mxu0 %v1338_v61 }
  0x3f   :  { %1355 = vmatpush1.bf16.msra.mxu1 %v1354_v62  ;;  %1341 = vmatprep.subr.bf16.mxu0 %v1340_v63  ;;  %v752_v50 = vrot.slane %v747_v46, %v751_v45  ;;  %v760_v52 = vrot.slane %v747_v46, %v759_v47  ;;  %v756_v53 = vrot.slane %v747_v46, %v755_v48 }
  0x40   :  { %1357 = vmatprep.subr.bf16.mxu1 %v1356_v4  ;;  %392 = vmatprep.mubr.f32.mxu0 %v1536_v0  ;;  %v764_v56 = vrot.slane %v747_v46, %v763_v49 }
  0x41   :  { %481 = vmatprep.mubr.f32.mxu1 %v1536_v0  ;;  %1184 = vmatmul.mubr.msk.f32.gmra.mrb[2].mxu0 %vm119_vm0, %v39_v11 }
  0x42   :  { %1343 = vmatpush1.bf16.msra.mxu0 %v1342_v10  ;;  %1188 = vmatmul.mubr.msk.f32.gmra.mrb[2].mxu1 %vm119_vm0, %v39_v11 }
  0x43   :  { %1359 = vmatpush1.bf16.msra.mxu1 %v1358_v12  ;;  %1345 = vmatprep.subr.bf16.mxu0 %v1344_v13 }
  0x44   :  { %1361 = vmatprep.subr.bf16.mxu1 %v1360_v17  ;;  %398 = vmatprep.mubr.f32.mxu0 %v1536_v0 }
  0x45   :  { %487 = vmatprep.mubr.f32.mxu1 %v1536_v0  ;;  %1185 = vmatmul.mubr.msk.f32.gmra.mrb[4].mxu0 %vm119_vm0, %v40_v24 }
  0x46   :  { %1347 = vmatpush1.bf16.msra.mxu0 %v1346_v23  ;;  %1189 = vmatmul.mubr.msk.f32.gmra.mrb[4].mxu1 %vm119_vm0, %v40_v24 }
  0x47   :  { %1363 = vmatpush1.bf16.msra.mxu1 %v1362_v25  ;;  %1349 = vmatprep.subr.bf16.mxu0 %v1348_v26 }
  0x48   :  { %1365 = vmatprep.subr.bf16.mxu1 %v1364_v29  ;;  %404 = vmatprep.mubr.f32.mxu0 %v1536_v0 }
  0x49   :  { %493 = vmatprep.mubr.f32.mxu1 %v1536_v0  ;;  %1186 = vmatmul.mubr.msk.f32.gmra.mrb[6].mxu0 %vm119_vm0, %v41_v33 }
  0x4a   :  { %1351 = vmatpush1.bf16.msra.mxu0 %v1350_v32  ;;  %1190 = vmatmul.mubr.msk.f32.gmra.mrb[6].mxu1 %vm119_vm0, %v41_v33 }
  0x4b   :  { %1367 = vmatpush1.bf16.msra.mxu1 %v1366_v34  ;;  %569 = vmatprep.subr.mxu0 %v538_v35 }
  0x4c   :  { %658 = vmatprep.subr.mxu1 %v540_v36  ;;  %617 = vmatprep.mubr.f32.mxu0 %v1536_v0  ;;  %v964_v36 = vld [vmem:[%s1890_s4 + $0x80] sm:$0xff] }
  0x4d   :  { %706 = vmatprep.mubr.f32.mxu1 %v1536_v0 }
  0x4e   :  { %570 = vmatpush1.msra.mxu0 %v537_v37  ;;  %v965_v37 = vld [vmem:[%s1890_s4 + $0x88] sm:$0xff] }
  0x4f   :  { %659 = vmatpush1.msra.mxu1 %v539_v38  ;;  %1191 = vmatmul.mubr.msk.f32.vlgmr.msra.gmra.mrb[0].mxu0 %vm119_vm0, %v500_v39  ;;  %v1384_v49 = vpack.c.bf16 %v965_v37, %v964_v36  ;;  %v956_v36 = vld [vmem:[%s1890_s4 + $0x40] sm:$0xff]  ;;  %v957_v37 = vld [vmem:[%s1890_s4 + $0x48] sm:$0xff] }
  0x50   :  { %1195 = vmatmul.mubr.msk.f32.vlgmr.msra.gmra.mrb[0].mxu1 %vm119_vm0, %v500_v39  ;;  %623 = vmatprep.mubr.f32.mxu0 %v1536_v0 }
  0x51   :  { %712 = vmatprep.mubr.f32.mxu1 %v1536_v0 }
  0x53   :  { %1192 = vmatmul.mubr.msk.f32.gmra.mrb[2].mxu0 %vm119_vm0, %v501_v40 }
  0x54   :  { %1196 = vmatmul.mubr.msk.f32.gmra.mrb[2].mxu1 %vm119_vm0, %v501_v40  ;;  %629 = vmatprep.mubr.f32.mxu0 %v1536_v0 }
  0x55   :  { %718 = vmatprep.mubr.f32.mxu1 %v1536_v0 }
  0x57   :  { %1193 = vmatmul.mubr.msk.f32.gmra.mrb[4].mxu0 %vm119_vm0, %v502_v41 }
  0x58   :  { %1197 = vmatmul.mubr.msk.f32.gmra.mrb[4].mxu1 %vm119_vm0, %v502_v41  ;;  %635 = vmatprep.mubr.f32.mxu0 %v1536_v0 }
  0x59   :  { %724 = vmatprep.mubr.f32.mxu1 %v1536_v0 }
  0x5b   :  { %1194 = vmatmul.mubr.msk.f32.gmra.mrb[6].mxu0 %vm119_vm0, %v503_v42 }
  0x5c   :  { %1198 = vmatmul.mubr.msk.f32.gmra.mrb[6].mxu1 %vm119_vm0, %v503_v42  ;;  %870 = vmatprep.mubr.f32.mxu0 %v1536_v0  ;;  %v996_v42 = vld [vmem:[%s1890_s4 + $0x180] sm:$0xff] }
  0x5d   :  { %941 = vmatprep.mubr.f32.mxu1 %v1536_v0 }
 0x122   :  { %v619_v51 = vpop.f32.mrb[0].mxu0 }
 0x123   :  { %v708_v54 = vpop.f32.mrb[0].mxu1  ;;  %v621_v55 = vpop.f32.mrb[1].mxu0  ;;  %v769_v58 = vadd.f32 %v752_v50, %v619_v51  ;;  %v949_v51 = vld [vmem:[%s1890_s4 + $0x8] sm:$0xff] }
 0x124   :  { %v710_v57 = vpop.f32.mrb[1].mxu1  ;;  %v771_v0 = vadd.f32 %v760_v52, %v708_v54  ;;  %v770_v59 = vadd.f32 %v756_v53, %v621_v55  ;;  %v1416_v54 = vpack.c.bf16 %v997_v43, %v996_v42  ;;  %v981_v55 = vld [vmem:[%s1890_s4 + $0x108] sm:$0xff]  ;;  %v975_v42 = vld [vmem:[%s1890_s4 + $0xd8] sm:$0xff]  ;;  %v1006_v43 = vld [vmem:[%s1890_s4 + $0x1d0] sm:$0xff] }
 0x125   :  { %v772_v61 = vadd.f32 %v764_v56, %v710_v57  ;;  %v785_v5 = vmax.f32 %v769_v58, 0.0  ;;  %v967_v57 = vld [vmem:[%s1890_s4 + $0x98] sm:$0xff]  ;;  %v998_v58 = vld [vmem:[%s1890_s4 + $0x190] sm:$0xff] }
 0x126   :  { %v625_v60 = vpop.f32.mrb[2].mxu0  ;;  %v787_v8 = vmax.f32 %v771_v0, 0.0  ;;  %v786_v9 = vmax.f32 %v770_v59, 0.0  ;;  %v999_v0 = vld [vmem:[%s1890_s4 + $0x198] sm:$0xff]  ;;  %v801_v59 = vld [vmem:[%s1889_s3] sm:$0x3] }
 0x127   :  { %v773_v62 = vadd.f32 %v752_v50, %v625_v60  ;;  %v714_v63 = vpop.f32.mrb[2].mxu1  ;;  %v627_v1 = vpop.f32.mrb[3].mxu0  ;;  %v788_v13 = vmax.f32 %v772_v61, 0.0 }
 0x128   :  { %v775_v2 = vadd.f32 %v760_v52, %v714_v63  ;;  %v774_v3 = vadd.f32 %v756_v53, %v627_v1  ;;  %v716_v4 = vpop.f32.mrb[3].mxu1  ;;  %v950_v63 = vld [vmem:[%s1890_s4 + $0x10] sm:$0xff]  ;;  %v951_v1 = vld [vmem:[%s1890_s4 + $0x18] sm:$0xff] }
 0x129   :  { %v789_v6 = vmax.f32 %v773_v62, 0.0  ;;  %v776_v7 = vadd.f32 %v764_v56, %v716_v4  ;;  %v983_v4 = vld [vmem:[%s1890_s4 + $0x118] sm:$0xff] }
 0x12a   :  { %v791_v10 = vmax.f32 %v775_v2, 0.0  ;;  %v790_v11 = vmax.f32 %v774_v3, 0.0  ;;  %v631_v12 = vpop.f32.mrb[4].mxu0  ;;  %v982_v2 = vld [vmem:[%s1890_s4 + $0x110] sm:$0xff]  ;;  %v1420_v3 = vpack.c.bf16 %v999_v0, %v998_v58 }
 0x12b   :  { %v1370_v14 = vpack.c.bf16 %v789_v6, %v785_v5  ;;  %v792_v15 = vmax.f32 %v776_v7, 0.0  ;;  %v720_v16 = vpop.f32.mrb[4].mxu1  ;;  %v633_v17 = vpop.f32.mrb[5].mxu0  ;;  %v777_v22 = vadd.f32 %v752_v50, %v631_v12  ;;  %v968_v5 = vld [vmem:[%s1890_s4 + $0xa0] sm:$0xff]  ;;  %v969_v6 = vld [vmem:[%s1890_s4 + $0xa8] sm:$0xff] }
 0x12c   :  { %v1378_v18 = vpack.c.bf16 %v791_v10, %v787_v8  ;;  %v1368_v19 = vpack.c.bf16 %v790_v11, %v786_v9  ;;  %v722_v20 = vpop.f32.mrb[5].mxu1  ;;  %v779_v23 = vadd.f32 %v760_v52, %v720_v16  ;;  %v778_v24 = vadd.f32 %v756_v53, %v633_v17  ;;  %v1000_v7 = vld [vmem:[%s1890_s4 + $0x1a0] sm:$0xff]  ;;  %v1001_v8 = vld [vmem:[%s1890_s4 + $0x1a8] sm:$0xff]  ;;  %v970_v17 = vld [vmem:[%s1890_s4 + $0xb0] sm:$0xff] }
 0x12d   :  { %v1376_v21 = vpack.c.bf16 %v792_v15, %v788_v13  ;;  %v780_v26 = vadd.f32 %v764_v56, %v722_v20  ;;  %v793_v33 = vmax.f32 %v777_v22, 0.0  ;;  %v1390_v9 = vpack.c.bf16 %v951_v1, %v950_v63  ;;  %v952_v12 = vld [vmem:[%s1890_s4 + $0x20] sm:$0xff]  ;;  %v953_v13 = vld [vmem:[%s1890_s4 + $0x28] sm:$0xff]  ;;  %v1003_v20 = vld [vmem:[%s1890_s4 + $0x1b8] sm:$0xff] }
 0x12e   :  { %v637_v25 = vpop.f32.mrb[6].mxu0  ;;  %1369 = vmatprep.subr.bf16.mxu0 %v1368_v19  ;;  %v795_v38 = vmax.f32 %v779_v23, 0.0  ;;  %v794_v39 = vmax.f32 %v778_v24, 0.0  ;;  %v1422_v10 = vpack.c.bf16 %v983_v4, %v982_v2  ;;  %v1392_v11 = vpack.c.bf16 %v969_v6, %v968_v5  ;;  %v985_v16 = vld [vmem:[%s1890_s4 + $0x128] sm:$0xff]  ;;  %v1002_v19 = vld [vmem:[%s1890_s4 + $0x1b0] sm:$0xff]  ;;  %v979_v2 = vld [vmem:[%s1890_s4 + $0xf8] sm:$0xff] }
 0x12f   :  { %v781_v27 = vadd.f32 %v752_v50, %v637_v25  ;;  %v726_v28 = vpop.f32.mrb[6].mxu1  ;;  %1377 = vmatprep.subr.bf16.mxu1 %v1376_v21  ;;  %v639_v29 = vpop.f32.mrb[7].mxu0  ;;  %1371 = vmatpush1.bf16.msra.mxu0 %v1370_v14  ;;  %v796_v44 = vmax.f32 %v780_v26, 0.0  ;;  %v948_v50 = vld [vmem:[%s1890_s4] sm:$0xff]  ;;  %v1424_v15 = vpack.c.bf16 %v1001_v8, %v1000_v7  ;;  %v1394_v21 = vpack.c.bf16 %v953_v13, %v952_v12  ;;  %v954_v24 = vld [vmem:[%s1890_s4 + $0x30] sm:$0xff]  ;;  %v955_v25 = vld [vmem:[%s1890_s4 + $0x38] sm:$0xff] }
 0x130   :  { %v783_v30 = vadd.f32 %v760_v52, %v726_v28  ;;  %v782_v31 = vadd.f32 %v756_v53, %v639_v29  ;;  %v728_v32 = vpop.f32.mrb[7].mxu1  ;;  %1379 = vmatpush1.bf16.msra.mxu1 %v1378_v18  ;;  %v980_v52 = vld [vmem:[%s1890_s4 + $0x100] sm:$0xff]  ;;  %v1386_v60 = vpack.c.bf16 %v949_v51, %v948_v50  ;;  %v971_v18 = vld [vmem:[%s1890_s4 + $0xb8] sm:$0xff]  ;;  %v986_v26 = vld [vmem:[%s1890_s4 + $0x130] sm:$0xff] }
 0x131   :  { %v797_v34 = vmax.f32 %v781_v27, 0.0  ;;  %v784_v35 = vadd.f32 %v764_v56, %v728_v32  ;;  %v966_v56 = vld [vmem:[%s1890_s4 + $0x90] sm:$0xff]  ;;  %v1418_v61 = vpack.c.bf16 %v981_v55, %v980_v52  ;;  %v984_v14 = vld [vmem:[%s1890_s4 + $0x120] sm:$0xff]  ;;  %v1396_v23 = vpack.c.bf16 %v971_v18, %v970_v17  ;;  %v987_v28 = vld [vmem:[%s1890_s4 + $0x138] sm:$0xff] }
 0x132   :  { %v799_v40 = vmax.f32 %v783_v30, 0.0  ;;  %v798_v41 = vmax.f32 %v782_v31, 0.0  ;;  %v1388_v62 = vpack.c.bf16 %v967_v57, %v966_v56  ;;  %v1426_v22 = vpack.c.bf16 %v985_v16, %v984_v14  ;;  %v972_v29 = vld [vmem:[%s1890_s4 + $0xc0] sm:$0xff]  ;;  %v973_v30 = vld [vmem:[%s1890_s4 + $0xc8] sm:$0xff]  ;;  %v990_v50 = vld [vmem:[%s1890_s4 + $0x150] sm:$0xff] }
 0x133   :  { %v1374_v45 = vpack.c.bf16 %v797_v34, %v793_v33  ;;  %v800_v46 = vmax.f32 %v784_v35, 0.0  ;;  %v1428_v27 = vpack.c.bf16 %v1003_v20, %v1002_v19  ;;  %v1004_v31 = vld [vmem:[%s1890_s4 + $0x1c0] sm:$0xff]  ;;  %v1005_v32 = vld [vmem:[%s1890_s4 + $0x1c8] sm:$0xff]  ;;  %v1398_v33 = vpack.c.bf16 %v955_v25, %v954_v24  ;;  %v991_v52 = vld [vmem:[%s1890_s4 + $0x158] sm:$0xff] }
 0x134   :  { %v1382_v47 = vpack.c.bf16 %v799_v40, %v795_v38  ;;  %v1372_v48 = vpack.c.bf16 %v798_v41, %v794_v39  ;;  %v1430_v34 = vpack.c.bf16 %v987_v28, %v986_v26  ;;  %v1400_v35 = vpack.c.bf16 %v973_v30, %v972_v29  ;;  %v988_v38 = vld [vmem:[%s1890_s4 + $0x140] sm:$0xff]  ;;  %v989_v40 = vld [vmem:[%s1890_s4 + $0x148] sm:$0xff]  ;;  %v974_v41 = vld [vmem:[%s1890_s4 + $0xd0] sm:$0xff] }
 0x135   :  { %v1380_v53 = vpack.c.bf16 %v800_v46, %v796_v44  ;;  %v1432_v39 = vpack.c.bf16 %v1005_v32, %v1004_v31  ;;  %v1007_v44 = vld [vmem:[%s1890_s4 + $0x1d8] sm:$0xff]  ;;  %v1434_v46 = vpack.c.bf16 %v989_v40, %v988_v38  ;;  %v1008_v55 = vld [vmem:[%s1890_s4 + $0x1e0] sm:$0xff]  ;;  %v1009_v56 = vld [vmem:[%s1890_s4 + $0x1e8] sm:$0xff]  ;;  %v1438_v58 = vpack.c.bf16 %v991_v52, %v990_v50 }
 0x136   :  { %1373 = vmatprep.subr.bf16.mxu0 %v1372_v48  ;;  %v958_v48 = vld [vmem:[%s1890_s4 + $0x50] sm:$0xff]  ;;  %v1436_v51 = vpack.c.bf16 %v1007_v44, %v1006_v43  ;;  %v993_v63 = vld [vmem:[%s1890_s4 + $0x168] sm:$0xff]  ;;  %v1011_v7 = vld [vmem:[%s1890_s4 + $0x1f8] sm:$0xff] }
 0x137   :  { %1381 = vmatprep.subr.bf16.mxu1 %v1380_v53  ;;  %1375 = vmatpush1.bf16.msra.mxu0 %v1374_v45  ;;  %v1402_v45 = vpack.c.bf16 %v957_v37, %v956_v36  ;;  %v976_v53 = vld [vmem:[%s1890_s4 + $0xe0] sm:$0xff]  ;;  %v978_v1 = vld [vmem:[%s1890_s4 + $0xf0] sm:$0xff]  ;;  %v995_v13 = vld [vmem:[%s1890_s4 + $0x178] sm:$0xff] }
 0x138   :  { %1383 = vmatpush1.bf16.msra.mxu1 %v1382_v47  ;;  %1385 = vmatprep.subr.bf16.mxu0 %v1384_v49  ;;  %v1404_v47 = vpack.c.bf16 %v975_v42, %v974_v41  ;;  %v959_v49 = vld [vmem:[%s1890_s4 + $0x58] sm:$0xff]  ;;  %v1412_v5 = vpack.c.bf16 %v979_v2, %v978_v1  ;;  %v1010_v6 = vld [vmem:[%s1890_s4 + $0x1f0] sm:$0xff]  ;;  %v1201_v20 = vld [vmem:[%s1891_s5] ss:$0 sm:$0xff] }
 0x139   :  { %1417 = vmatprep.subr.bf16.mxu1 %v1416_v54  ;;  %v977_v54 = vld [vmem:[%s1890_s4 + $0xe8] sm:$0xff]  ;;  %v1406_v57 = vpack.c.bf16 %v959_v49, %v958_v48  ;;  %v962_v8 = vld [vmem:[%s1890_s4 + $0x70] sm:$0xff] }
 0x13a   :  { %1199 = vmatmul.mubr.msk.f32.vlgmr.msra.gmra.mrb[8].mxu0 %vm802_vm1, %v801_v59  ;;  %v1408_v0 = vpack.c.bf16 %v977_v54, %v976_v53 }
 0x13b   :  { %1200 = vmatmul.mubr.msk.f32.vlgmr.msra.gmra.mrb[8].mxu1 %vm802_vm1, %v801_v59  ;;  %1387 = vmatpush3.bf16.msra.mxu0 %v1386_v60  ;;  %v960_v59 = vld [vmem:[%s1890_s4 + $0x60] sm:$0xff]  ;;  %v961_v60 = vld [vmem:[%s1890_s4 + $0x68] sm:$0xff] }
 0x13c   :  { %1419 = vmatpush3.bf16.msra.mxu1 %v1418_v61  ;;  %1389 = vmatprep.subr.bf16.mxu0 %v1388_v62  ;;  %v992_v61 = vld [vmem:[%s1890_s4 + $0x160] sm:$0xff]  ;;  %v1440_v62 = vpack.c.bf16 %v1009_v56, %v1008_v55 }
 0x13d   :  { %1421 = vmatprep.subr.bf16.mxu1 %v1420_v3  ;;  %v1410_v3 = vpack.c.bf16 %v961_v60, %v960_v59  ;;  %v1442_v4 = vpack.c.bf16 %v993_v63, %v992_v61 }
 0x13f   :  { %1391 = vmatpush3.bf16.msra.mxu0 %v1390_v9  ;;  %v963_v9 = vld [vmem:[%s1890_s4 + $0x78] sm:$0xff] }
 0x140   :  { %1423 = vmatpush3.bf16.msra.mxu1 %v1422_v10  ;;  %1393 = vmatprep.subr.bf16.mxu0 %v1392_v11  ;;  %v1444_v10 = vpack.c.bf16 %v1011_v7, %v1010_v6  ;;  %v994_v11 = vld [vmem:[%s1890_s4 + $0x170] sm:$0xff]  ;;  %v1414_v12 = vpack.c.bf16 %v963_v9, %v962_v8  ;;  %s1537_s4 = smov [#allocation5]  }
 0x141   :  { %1425 = vmatprep.subr.bf16.mxu1 %v1424_v15  ;;  %v1446_v14 = vpack.c.bf16 %v995_v13, %v994_v11  ;;  %s1166_s29 = sshll.u32 %s1537_s4, 4  ;;  %s1167_s29 = int_to_ptr.vmem [resolvable:$true] %s1166_s29 }
 0x142   :  { %s1507_s30 = scalar_lea.vmem %s1167_s29, 32  ;;  %p1512_p9 = scmp.lt.s32.totalorder %s1167_s29, %s1167_s29 }
 0x143   :  { %1395 = vmatpush3.bf16.msra.mxu0 %v1394_v21  ;;  %p1508_p8 = scmp.ne.s32.totalorder %s1167_s29, %s1507_s30  ;;  %p1513_p10 = scmp.lt.s32.totalorder %s1507_s30, %s1507_s30 }
 0x144   :  { %1427 = vmatpush3.bf16.msra.mxu1 %v1426_v22  ;;  %1397 = vmatprep.subr.bf16.mxu0 %v1396_v23 }
 0x145   :  { %1429 = vmatprep.subr.bf16.mxu1 %v1428_v27  ;;  %p1514_p11 = por %p1513_p10, %p1512_p9 }
 0x147   :  { %1399 = vmatpush3.bf16.msra.mxu0 %v1398_v33  ;;  %p1515_p12 = pnand %p1514_p11, %p1508_p8 }
 0x148   :  { %1431 = vmatpush3.bf16.msra.mxu1 %v1430_v34  ;;  %1401 = vmatprep.subr.bf16.mxu0 %v1400_v35 }
 0x149   :  { %1433 = vmatprep.subr.bf16.mxu1 %v1432_v39 }
 0x14b   :  { %1403 = vmatpush3.bf16.msra.mxu0 %v1402_v45 }
 0x14c   :  { %1435 = vmatpush3.bf16.msra.mxu1 %v1434_v46  ;;  %1405 = vmatprep.subr.bf16.mxu0 %v1404_v47 }
 0x14d   :  { %1437 = vmatprep.subr.bf16.mxu1 %v1436_v51 }
 0x14f   :  { %1407 = vmatpush3.bf16.msra.mxu0 %v1406_v57 }
 0x150   :  { %1439 = vmatpush3.bf16.msra.mxu1 %v1438_v58  ;;  %1409 = vmatprep.subr.bf16.mxu0 %v1408_v0 }
 0x151   :  { %1441 = vmatprep.subr.bf16.mxu1 %v1440_v62 }
 0x153   :  { %1411 = vmatpush3.bf16.msra.mxu0 %v1410_v3 }
 0x154   :  { %1443 = vmatpush3.bf16.msra.mxu1 %v1442_v4  ;;  %1413 = vmatprep.subr.bf16.mxu0 %v1412_v5 }
 0x155   :  { %1445 = vmatprep.subr.bf16.mxu1 %v1444_v10 }
 0x157   :  { %1415 = vmatpush3.bf16.msra.mxu0 %v1414_v12 }
 0x158   :  { %1447 = vmatpush3.bf16.msra.mxu1 %v1446_v14 }
 0x20d   :  { %v872_v15 = vpop.f32.mrb[8].mxu0 }
 0x20e   :  { %v874_v16 = vpop.f32.mrb[9].mxu0  ;;  %v943_v17 = vpop.f32.mrb[8].mxu1 }
 0x20f   :  { %1083 = vmatprep.mubr.f32.mxu0 %v874_v16  ;;  %v945_v18 = vpop.f32.mrb[9].mxu1 }
 0x210   :  { %1084 = vmatmul.mubr.f32.vlgmr.msra.gmra.mrb[10].mxu0 %v872_v15  ;;  %1153 = vmatprep.mubr.f32.mxu1 %v945_v18 }
 0x211   :  { %1154 = vmatmul.mubr.f32.vlgmr.msra.gmra.mrb[10].mxu1 %v943_v17 }
 0x2e3   :  { %v1234_v19 = vpop.f32.mrb[10].mxu0 }
 0x2e4   :  { %v1235_v21 = vpop.f32.mrb[11].mxu0  ;;  %v1269_v22 = vpop.f32.mrb[10].mxu1 }
 0x2e5   :  { %v1236_v23 = vadd.f32 %v1235_v21, %v1234_v19  ;;  %v1270_v24 = vpop.f32.mrb[11].mxu1 }
 0x2e6   :  { %v1271_v25 = vadd.f32 %v1270_v24, %v1269_v22 }
 0x2e7   :  { %v1086_v26 = vadd.f32 %v1236_v23, %v1201_v20 }
 0x2e9   :  { %v1156_v27 = vadd.f32 %v1271_v25, %v1086_v26 }
 0x2eb   :  { %1159 = vst [vmem:[#allocation5] sm:$0x3] %v1156_v27 }
 0x2ec   :  { %1518 = shalt.err (!%p1515_p12)
}
 0x2ed   :  { %s1519_s8 = scalar_lea.hbm %s1892_s6, 32 }
 0x2ee   :  { %p1520_p13 = scmp.ne.s32.totalorder %s1892_s6, %s1519_s8  ;;  %p1523_p0 = scmp.lt.u32.totalorder %s1519_s8, %s1892_s6 }
 0x2f0   :  { %p1525_p1 = pnand %p1523_p0, %p1520_p13 }
 0x2f2   :  { %1528 = shalt.err (!%p1525_p1)
}
 0x2f3   :  { %1169 = dma.vmem_to_hbm [thread:$0]  %s1167_s29, 32, %s1892_s6, [#allocation4]  }
 0x2f4   :  { %1531 = dma.done.wait [#allocation4], 32  }
 0x2f5   :  { %1532 = vsyncadd [#allocation4], 4294967264 }
 0x2f6   :  { %1173 = vsyncpa [#allocation3], 1 }
 0x2f7   :  { %1174 = vsyncpa [#allocation4], 1 }

</bundles_post_ra>
